<compile_context>
chip_gen: v6e
topology: v6e:2x2x1
jax: 0.10.0
libtpu: 0.0.40
codegen_flags: <defaults>
</compile_context>

<pallas_src>
from itertools import chain, combinations

import numpy as np
import jax
import jax.numpy as jnp
from jax.experimental import pallas as pl
from jax.experimental.pallas import tpu as pltpu


# ------------------------------- helpers ------------------------------------

def _round_up(x, m):
    return ((x + m - 1) // m) * m


def _linear_params(key, fan_in, fan_out):
    kw, kb = jax.random.split(key)
    w = jax.random.normal(kw, (fan_in, fan_out), jnp.float32) / np.sqrt(fan_in)
    b = 0.01 * jax.random.normal(kb, (1, fan_out), jnp.float32)
    return (w, b)


def _hdot(a, b):
    return jnp.dot(a, b, precision=jax.lax.Precision.HIGHEST)


def _fold_linear_pair(p0, p1):
    """(x@w0+b0)@w1 + b1 == x@(w0@w1) + (b0@w1 + b1); folded in f32/HIGHEST."""
    (w0, b0), (w1, b1) = p0, p1
    return _hdot(w0, w1), _hdot(b0, w1) + b1


def _block_diag_np(mats):
    mats = [np.asarray(m, np.float32) for m in mats]
    rows = sum(m.shape[0] for m in mats)
    cols = sum(m.shape[1] for m in mats)
    out = np.zeros((rows, cols), np.float32)
    r = c = 0
    for m in mats:
        out[r:r + m.shape[0], c:c + m.shape[1]] = m
        r += m.shape[0]
        c += m.shape[1]
    return out


class _SlabPacker:
    """Packs 2-D f32 params (K x N, N <= 128) into one [R, 128] slab.

    Every entry starts at an 8-aligned row and at lane 0, so in-kernel reads
    are cheap static slices of a single VMEM-resident ref (one DMA operand
    for all 25+ weights / biases / selection matrices).
    """
    LANES = 128

    def __init__(self):
        self._mats = []
        self._meta = []          # (row, K, N)
        self._rows = 0

    def add(self, mat):
        mat = np.asarray(mat, np.float32)
        if mat.ndim == 1:
            mat = mat[None, :]
        K, N = mat.shape
        assert N <= self.LANES, f"param lane width {N} > 128; re-tile the pack"
        self._meta.append((self._rows, K, N))
        self._mats.append(mat)
        self._rows += _round_up(K, 8)
        return len(self._meta) - 1

    def finalize(self):
        R = max(_round_up(self._rows, 8), 8)
        slab = np.zeros((R, self.LANES), np.float32)
        for (r, K, N), m in zip(self._meta, self._mats):
            slab[r:r + K, :N] = m
        self.meta = tuple(self._meta)
        return jnp.asarray(slab)


# --------------------------- pure-JAX reference ------------------------------

def _mlp3_ref(x, params):
    (w0, b0), (w1, b1), (w2, b2) = params
    h = _hdot(x, w0) + b0
    h = _hdot(h, w1) + b1
    h = jnp.maximum(h, 0.0)
    return _hdot(h, w2) + b2


def _efficacy_ref(x, params):
    (w0, b0), (w1, b1), (w2, b2), (w3, b3) = params
    h = _hdot(x, w0) + b0
    h = _hdot(h, w1) + b1
    h = jnp.maximum(h, 0.0)
    h = _hdot(h, w2) + b2
    return _hdot(h, w3) + b3


# ------------------------------ fused model ----------------------------------

class DynamicFusionGraphPallas:
    def __init__(self, in_dimensions, out_dimension, pattern_in, pattern_hid,
                 eff_in, eff_hid, key):
        self.n = n = len(in_dimensions)
        assert n >= 2
        self.in_dimensions = tuple(int(d) for d in in_dimensions)
        self.out_dimension = out_dimension = int(out_dimension)
        d_in = sum(self.in_dimensions)

        # powerset of modality indices (non-empty, increasing size) — torch order
        self.powerset = list(chain.from_iterable(
            combinations(range(n), r) for r in range(n + 1)))[1:]
        self.multi_subsets = self.powerset[n:]

        self.input_shapes = {(i,): d for i, d in enumerate(self.in_dimensions)}
        self.total_input_efficacies = 0
        for subset in self.multi_subsets:
            unimodal = sum(self.in_dimensions[m] for m in subset)
            multimodal = (2 ** len(subset) - 2 - len(subset)) * out_dimension
            self.total_input_efficacies += 2 ** len(subset) - 2
            self.input_shapes[subset] = unimodal + multimodal
        self.total_input_efficacies += 2 ** n - 1
        self.t_in_dimension = d_in + (2 ** n - n - 1) * out_dimension

        # ---- static plan: which efficacy column scales which child ----------
        col = 0
        self.subset_plan = []          # [(parent, [(child, eff_col), ...]), ...]
        last_sps = None
        for subset in self.multi_subsets:
            sps = list(chain.from_iterable(
                combinations(subset, r) for r in range(len(subset) + 1)))[1:-1]
            self.subset_plan.append(
                (subset, [(child, col + y) for y, child in enumerate(sps)]))
            col += len(sps)
            last_sps = sps
        t_children = list(last_sps) + [tuple(range(n))]
        self.t_plan = [(child, col + y) for y, child in enumerate(t_children)]

        # group same-cardinality subset nets into "levels" (block-diag packed)
        self.levels = []
        for item in self.subset_plan:
            if not self.levels or len(self.levels[-1][-1][0]) != len(item[0]):
                self.levels.append([])
            self.levels[-1].append(item)

        # ---- parameters (per-subset; used directly by the pure-JAX ref) -----
        keys = jax.random.split(key, len(self.multi_subsets) + 2)
        self.net_params = {}
        for kk, subset in zip(keys[:len(self.multi_subsets)], self.multi_subsets):
            k0, k1, k2 = jax.random.split(kk, 3)
            self.net_params[subset] = (
                _linear_params(k0, self.input_shapes[subset], pattern_in),
                _linear_params(k1, pattern_in, pattern_hid),
                _linear_params(k2, pattern_hid, out_dimension),
            )
        k0, k1, k2 = jax.random.split(keys[-2], 3)
        self.t_params = (
            _linear_params(k0, self.t_in_dimension, pattern_in),
            _linear_params(k1, pattern_in, pattern_hid),
            _linear_params(k2, pattern_hid, out_dimension),
        )
        k0, k1, k2, k3 = jax.random.split(keys[-1], 4)
        self.eff_params = (
            _linear_params(k0, d_in, eff_in),
            _linear_params(k1, eff_in, eff_hid),
            _linear_params(k2, eff_hid, eff_hid),
            _linear_params(k3, eff_hid, self.total_input_efficacies),
        )

        # ---- child -> (source index, offset within source, width) -----------
        # source 0 = concatenated input x; source l+1 = packed output of level l
        offs = np.cumsum([0] + list(self.in_dimensions))
        child_loc = {}
        for i in range(n):
            child_loc[(i,)] = (0, int(offs[i]), self.in_dimensions[i])
        src_widths = [d_in]
        for l, lvl in enumerate(self.levels):
            for j, (parent, _e) in enumerate(lvl):
                child_loc[parent] = (l + 1, j * out_dimension, out_dimension)
            src_widths.append(len(lvl) * out_dimension)

        n_eff = self.total_input_efficacies

        def build_selectors(entries, in_width):
            """entries: [(child, eff_col), ...] in lane order of the net input.
            Returns per-source 0/1 gather matrices and an efficacy-broadcast
            0/1 matrix so that:  net_input = (sum_src src @ S_src) * (eff @ E)."""
            S = {}
            E = np.zeros((n_eff, in_width), np.float32)
            c = 0
            for child, ecol in entries:
                src, off, w = child_loc[child]
                if src not in S:
                    S[src] = np.zeros((src_widths[src], in_width), np.float32)
                S[src][off:off + w, c:c + w] = np.eye(w, dtype=np.float32)
                E[ecol, c:c + w] = 1.0
                c += w
            assert c == in_width
            return sorted(S.items()), E

        # ---- fold + block-diag pack + single-slab pack of all params --------
        packer = _SlabPacker()

        ewA, ebA = _fold_linear_pair(self.eff_params[0], self.eff_params[1])
        ewB, ebB = _fold_linear_pair(self.eff_params[2], self.eff_params[3])
        self._eff_idx = dict(wA=packer.add(ewA), bA=packer.add(ebA),
                             wB=packer.add(ewB), bB=packer.add(ebB))

        self._level_idx = []
        for lvl in self.levels:
            subs = [parent for (parent, _e) in lvl]
            in_width = sum(self.input_shapes[s] for s in subs)
            folded = [_fold_linear_pair(self.net_params[s][0],
                                        self.net_params[s][1]) for s in subs]
            wA = _block_diag_np([f[0] for f in folded])
            bA = np.concatenate([np.asarray(f[1]) for f in folded], axis=1)
            wB = _block_diag_np([self.net_params[s][2][0] for s in subs])
            bB = np.concatenate(
                [np.asarray(self.net_params[s][2][1]) for s in subs], axis=1)
            flat_children = [e for (_parent, entries) in lvl for e in entries]
            sel, E = build_selectors(flat_children, in_width)
            self._level_idx.append(dict(
                sel=tuple((src, packer.add(S)) for src, S in sel),
                E=packer.add(E),
                wA=packer.add(wA), bA=packer.add(bA),
                wB=packer.add(wB), bB=packer.add(bB)))

        twA, tbA = _fold_linear_pair(self.t_params[0], self.t_params[1])
        sel_t, E_t = build_selectors(self.t_plan, self.t_in_dimension)
        self._t_idx = dict(
            sel=tuple((src, packer.add(S)) for src, S in sel_t),
            E=packer.add(E_t),
            wA=packer.add(twA), bA=packer.add(tbA),
            wB=packer.add(self.t_params[2][0]),
            bB=packer.add(self.t_params[2][1]))

        self.param_slab = packer.finalize()     # single [R, 128] f32 operand
        self._meta = packer.meta

        # lane-dense output slab: [level outputs | t_output | efficacies | pad]
        used = (len(self.multi_subsets) + 1) * out_dimension + n_eff
        self.slab_width = _round_up(used, 128)

        self._kernel = self._build_kernel()

    # ------------------------------ Pallas kernel ----------------------------

    def _build_kernel(self):
        meta = self._meta
        eff_idx = self._eff_idx
        level_idx = self._level_idx
        t_idx = self._t_idx
        out_dim = self.out_dimension
        n_eff = self.total_input_efficacies

        def kernel(x_ref, p_ref, o_ref):
            def prm(i):                      # static sub-view of the param slab
                r, K, N = meta[i]
                return p_ref[r:r + K, 0:N]

            def dotp(a, i):
                # NOTE: for v6e at TB>=128, casting `a`/prm(i) to bf16 here
                # (keeping f32 accumulation) cuts MXU pass count ~3x.
                return jnp.dot(a, prm(i), preferred_element_type=jnp.float32)

            def dense(a, wi, bi):
                return dotp(a, wi) + prm(bi)

            x = x_ref[...]                                    # [TB, d_in]

            # ---- efficacy MLP (folded): Linear -> ReLU -> Linear ------------
            h = jnp.maximum(dense(x, eff_idx['wA'], eff_idx['bA']), 0.0)
            eff = dense(h, eff_idx['wB'], eff_idx['bB'])      # [TB, n_eff]

            # ---- packed per-cardinality subset nets -------------------------
            # gather + per-child efficacy broadcast done as tiny MXU dots
            # against 0/1 selection matrices (no lane shuffles / concats)
            sources = [x]                     # source l+1 = output of level l
            for lp in level_idx:
                gathered = None
                for (src, si) in lp['sel']:
                    part = dotp(sources[src], si)
                    gathered = part if gathered is None else gathered + part
                lin = gathered * dotp(eff, lp['E'])
                h = jnp.maximum(dense(lin, lp['wA'], lp['bA']), 0.0)
                sources.append(dense(h, lp['wB'], lp['bB']))

            # ---- t network ----------------------------------------------------
            gathered = None
            for (src, si) in t_idx['sel']:
                part = dotp(sources[src], si)
                gathered = part if gathered is None else gathered + part
            tin = gathered * dotp(eff, t_idx['E'])
            h = jnp.maximum(dense(tin, t_idx['wA'], t_idx['bA']), 0.0)
            t_out = dense(h, t_idx['wB'], t_idx['bB'])        # [TB, out_dim]

            # ---- lane-dense output block: direct static-slice stores ----------
            o_ref[...] = jnp.zeros(o_ref.shape, o_ref.dtype)  # pad lanes once
            off = 0
            for lvl_out in sources[1:]:
                w = lvl_out.shape[1]
                o_ref[:, off:off + w] = lvl_out
                off += w
            o_ref[:, off:off + out_dim] = t_out
            off += out_dim
            o_ref[:, off:off + n_eff] = eff

        return kernel

    # ------------------------------ forward paths ----------------------------

    def forward(self, in_modalities):
        B = in_modalities[0].shape[0]
        x_cat = jnp.concatenate(in_modalities, axis=1).astype(jnp.float32)
        d_in = x_cat.shape[1]

        # TB <= 128 keeps live-vreg pressure low; once B >= 16 split into >= 2
        # grid steps so the "parallel" batch axis feeds both v7x TensorCores.
        if B >= 16:
            TB = min(128, _round_up((B + 1) // 2, 8))
        else:
            TB = _round_up(max(B, 1), 8)
        B_pad = _round_up(B, TB)
        if B_pad != B:
            x_cat = jnp.pad(x_cat, ((0, B_pad - B), (0, 0)))

        slab = pl.pallas_call(
            self._kernel,
            out_shape=jax.ShapeDtypeStruct((B_pad, self.slab_width), jnp.float32),
            grid_spec=pltpu.PrefetchScalarGridSpec(
                num_scalar_prefetch=0,
                grid=(B_pad // TB,),
                in_specs=[pl.BlockSpec((TB, d_in), lambda b: (b, 0)),
                          pl.BlockSpec(self.param_slab.shape, lambda b: (0, 0))],
                out_specs=pl.BlockSpec((TB, self.slab_width), lambda b: (b, 0))),
            compiler_params=pltpu.CompilerParams(
                dimension_semantics=("parallel",)),
        )(x_cat, self.param_slab)

        slab = slab[:B]
        out_dim = self.out_dimension
        outputs = {(i,): m for i, m in enumerate(in_modalities)}
        off = 0
        for s in self.multi_subsets:
            outputs[s] = slab[:, off:off + out_dim]
            off += out_dim
        t_output = slab[:, off:off + out_dim]
        off += out_dim
        efficacies = slab[:, off:off + self.total_input_efficacies]
        return t_output, outputs, efficacies

    def forward_reference(self, in_modalities):
        """Pure-JAX reference (per-subset, unfolded weights) — mirrors torch."""
        outputs = {(i,): m for i, m in enumerate(in_modalities)}
        efficacies = _efficacy_ref(jnp.concatenate(in_modalities, axis=1),
                                   self.eff_params)
        for (subset, entries) in self.subset_plan:
            cat_in = jnp.concatenate(
                [outputs[child] * efficacies[:, c:c + 1] for (child, c) in entries],
                axis=1)
            assert cat_in.shape[1] == self.input_shapes[subset]
            outputs[subset] = _mlp3_ref(cat_in, self.net_params[subset])
        t_in = jnp.concatenate(
            [outputs[child] * efficacies[:, c:c + 1] for (child, c) in self.t_plan],
            axis=1)
        assert t_in.shape[1] == self.t_in_dimension
        t_output = _mlp3_ref(t_in, self.t_params)
        return t_output, outputs, efficacies


# ----------------------------------- main ------------------------------------

if __name__ == "__main__":
    root = jax.random.PRNGKey(0)
    k_model, k0, k1, k2 = jax.random.split(root, 4)

    batch = 4
    in_dims = (8, 16, 12)          # 3 modalities
    out_dim = 16
    pattern_in, pattern_hid = 24, 32
    eff_in, eff_hid = 24, 32

    model = DynamicFusionGraphPallas(in_dims, out_dim, pattern_in, pattern_hid,
                                     eff_in, eff_hid, k_model)

    modalities = [
        jax.random.normal(k, (batch, d), jnp.float32)
        for k, d in zip((k0, k1, k2), in_dims)
    ]

    t_out, outputs, efficacies = model.forward(modalities)
    jax.block_until_ready(t_out)

    # correctness check vs. pure-JAX reference
    t_ref, outputs_ref, eff_ref = model.forward_reference(modalities)
    np.testing.assert_allclose(np.asarray(efficacies), np.asarray(eff_ref),
                               rtol=2e-2, atol=2e-2)
    for key in outputs_ref:
        np.testing.assert_allclose(np.asarray(outputs[key]),
                                   np.asarray(outputs_ref[key]),
                                   rtol=2e-2, atol=2e-2)
    np.testing.assert_allclose(np.asarray(t_out), np.asarray(t_ref),
                               rtol=2e-2, atol=2e-2)

    assert t_out.shape == (batch, out_dim)
    assert efficacies.shape == (batch, model.total_input_efficacies)
    print("KERNEL_OK")
</pallas_src>

<mosaic_0001>
module attributes {stable_mosaic.version = 11 : i64} {
  func.func @kernel(%arg0: i32, %arg1: memref<8x36xf32, #tpu.memory_space<vmem>>, %arg2: memref<864x128xf32, #tpu.memory_space<vmem>>, %arg3: memref<8x128xf32, #tpu.memory_space<vmem>>) attributes {dimension_semantics = [#tpu.dimension_semantics<parallel>], iteration_bounds = array<i64: 1>, scalar_prefetch = 0 : i64, scratch_operands = 0 : i64, tpu.core_type = #tpu.core_type<tc>, window_params = [{transform_indices = @transform_0, window_bounds = array<i64: 8, 36>}, {pipeline_mode = #tpu.pipeline_mode<synchronous>, transform_indices = @transform_1, window_bounds = array<i64: 864, 128>}, {transform_indices = @transform_2, window_bounds = array<i64: 8, 128>}]} {
    %c0 = arith.constant 0 : index
    %c0_0 = arith.constant 0 : index
    %0 = vector.load %arg1[%c0, %c0_0] : memref<8x36xf32, #tpu.memory_space<vmem>>, vector<8x36xf32>
    %c0_1 = arith.constant 0 : index
    %c0_2 = arith.constant 0 : index
    %1 = vector.load %arg2[%c0_1, %c0_2] : memref<864x128xf32, #tpu.memory_space<vmem>>, vector<36x32xf32>
    %cst = arith.constant dense<0.000000e+00> : vector<8x32xf32>
    %2 = tpu.matmul %0, %1, %cst {dimension_numbers = #tpu.dot_dimension_numbers<[1], [0], [0], [1], [0, 0, 1, 1], [], []>} : vector<8x36xf32>, vector<36x32xf32>, vector<8x32xf32> -> vector<8x32xf32>
    %c40 = arith.constant 40 : index
    %c0_3 = arith.constant 0 : index
    %3 = vector.load %arg2[%c40, %c0_3] : memref<864x128xf32, #tpu.memory_space<vmem>>, vector<1x32xf32>
    %4 = vector.broadcast %3 : vector<1x32xf32> to vector<8x32xf32>
    %5 = arith.addf %2, %4 : vector<8x32xf32>
    %cst_4 = arith.constant 0.000000e+00 : f32
    %6 = vector.broadcast %cst_4 : f32 to vector<8x32xf32>
    %7 = arith.maximumf %5, %6 : vector<8x32xf32>
    %c48 = arith.constant 48 : index
    %c0_5 = arith.constant 0 : index
    %8 = vector.load %arg2[%c48, %c0_5] : memref<864x128xf32, #tpu.memory_space<vmem>>, vector<32x19xf32>
    %cst_6 = arith.constant dense<0.000000e+00> : vector<8x19xf32>
    %9 = tpu.matmul %7, %8, %cst_6 {dimension_numbers = #tpu.dot_dimension_numbers<[1], [0], [0], [1], [0, 0, 1, 1], [], []>} : vector<8x32xf32>, vector<32x19xf32>, vector<8x19xf32> -> vector<8x19xf32>
    %c80 = arith.constant 80 : index
    %c0_7 = arith.constant 0 : index
    %10 = vector.load %arg2[%c80, %c0_7] : memref<864x128xf32, #tpu.memory_space<vmem>>, vector<1x19xf32>
    %11 = vector.broadcast %10 : vector<1x19xf32> to vector<8x19xf32>
    %12 = arith.addf %9, %11 : vector<8x19xf32>
    %c88 = arith.constant 88 : index
    %c0_8 = arith.constant 0 : index
    %13 = vector.load %arg2[%c88, %c0_8] : memref<864x128xf32, #tpu.memory_space<vmem>>, vector<36x72xf32>
    %cst_9 = arith.constant dense<0.000000e+00> : vector<8x72xf32>
    %14 = tpu.matmul %0, %13, %cst_9 {dimension_numbers = #tpu.dot_dimension_numbers<[1], [0], [0], [1], [0, 0, 1, 1], [], []>} : vector<8x36xf32>, vector<36x72xf32>, vector<8x72xf32> -> vector<8x72xf32>
    %c128 = arith.constant 128 : index
    %c0_10 = arith.constant 0 : index
    %15 = vector.load %arg2[%c128, %c0_10] : memref<864x128xf32, #tpu.memory_space<vmem>>, vector<19x72xf32>
    %cst_11 = arith.constant dense<0.000000e+00> : vector<8x72xf32>
    %16 = tpu.matmul %12, %15, %cst_11 {dimension_numbers = #tpu.dot_dimension_numbers<[1], [0], [0], [1], [0, 0, 1, 1], [], []>} : vector<8x19xf32>, vector<19x72xf32>, vector<8x72xf32> -> vector<8x72xf32>
    %17 = arith.mulf %14, %16 : vector<8x72xf32>
    %c152 = arith.constant 152 : index
    %c0_12 = arith.constant 0 : index
    %18 = vector.load %arg2[%c152, %c0_12] : memref<864x128xf32, #tpu.memory_space<vmem>>, vector<72x96xf32>
    %cst_13 = arith.constant dense<0.000000e+00> : vector<8x96xf32>
    %19 = tpu.matmul %17, %18, %cst_13 {dimension_numbers = #tpu.dot_dimension_numbers<[1], [0], [0], [1], [0, 0, 1, 1], [], []>} : vector<8x72xf32>, vector<72x96xf32>, vector<8x96xf32> -> vector<8x96xf32>
    %c224 = arith.constant 224 : index
    %c0_14 = arith.constant 0 : index
    %20 = vector.load %arg2[%c224, %c0_14] : memref<864x128xf32, #tpu.memory_space<vmem>>, vector<1x96xf32>
    %21 = vector.broadcast %20 : vector<1x96xf32> to vector<8x96xf32>
    %22 = arith.addf %19, %21 : vector<8x96xf32>
    %cst_15 = arith.constant 0.000000e+00 : f32
    %23 = vector.broadcast %cst_15 : f32 to vector<8x96xf32>
    %24 = arith.maximumf %22, %23 : vector<8x96xf32>
    %c232 = arith.constant 232 : index
    %c0_16 = arith.constant 0 : index
    %25 = vector.load %arg2[%c232, %c0_16] : memref<864x128xf32, #tpu.memory_space<vmem>>, vector<96x48xf32>
    %cst_17 = arith.constant dense<0.000000e+00> : vector<8x48xf32>
    %26 = tpu.matmul %24, %25, %cst_17 {dimension_numbers = #tpu.dot_dimension_numbers<[1], [0], [0], [1], [0, 0, 1, 1], [], []>} : vector<8x96xf32>, vector<96x48xf32>, vector<8x48xf32> -> vector<8x48xf32>
    %c328 = arith.constant 328 : index
    %c0_18 = arith.constant 0 : index
    %27 = vector.load %arg2[%c328, %c0_18] : memref<864x128xf32, #tpu.memory_space<vmem>>, vector<1x48xf32>
    %28 = vector.broadcast %27 : vector<1x48xf32> to vector<8x48xf32>
    %29 = arith.addf %26, %28 : vector<8x48xf32>
    %c336 = arith.constant 336 : index
    %c0_19 = arith.constant 0 : index
    %30 = vector.load %arg2[%c336, %c0_19] : memref<864x128xf32, #tpu.memory_space<vmem>>, vector<36x84xf32>
    %cst_20 = arith.constant dense<0.000000e+00> : vector<8x84xf32>
    %31 = tpu.matmul %0, %30, %cst_20 {dimension_numbers = #tpu.dot_dimension_numbers<[1], [0], [0], [1], [0, 0, 1, 1], [], []>} : vector<8x36xf32>, vector<36x84xf32>, vector<8x84xf32> -> vector<8x84xf32>
    %c376 = arith.constant 376 : index
    %c0_21 = arith.constant 0 : index
    %32 = vector.load %arg2[%c376, %c0_21] : memref<864x128xf32, #tpu.memory_space<vmem>>, vector<48x84xf32>
    %cst_22 = arith.constant dense<0.000000e+00> : vector<8x84xf32>
    %33 = tpu.matmul %29, %32, %cst_22 {dimension_numbers = #tpu.dot_dimension_numbers<[1], [0], [0], [1], [0, 0, 1, 1], [], []>} : vector<8x48xf32>, vector<48x84xf32>, vector<8x84xf32> -> vector<8x84xf32>
    %34 = arith.addf %31, %33 : vector<8x84xf32>
    %c424 = arith.constant 424 : index
    %c0_23 = arith.constant 0 : index
    %35 = vector.load %arg2[%c424, %c0_23] : memref<864x128xf32, #tpu.memory_space<vmem>>, vector<19x84xf32>
    %cst_24 = arith.constant dense<0.000000e+00> : vector<8x84xf32>
    %36 = tpu.matmul %12, %35, %cst_24 {dimension_numbers = #tpu.dot_dimension_numbers<[1], [0], [0], [1], [0, 0, 1, 1], [], []>} : vector<8x19xf32>, vector<19x84xf32>, vector<8x84xf32> -> vector<8x84xf32>
    %37 = arith.mulf %34, %36 : vector<8x84xf32>
    %c448 = arith.constant 448 : index
    %c0_25 = arith.constant 0 : index
    %38 = vector.load %arg2[%c448, %c0_25] : memref<864x128xf32, #tpu.memory_space<vmem>>, vector<84x32xf32>
    %cst_26 = arith.constant dense<0.000000e+00> : vector<8x32xf32>
    %39 = tpu.matmul %37, %38, %cst_26 {dimension_numbers = #tpu.dot_dimension_numbers<[1], [0], [0], [1], [0, 0, 1, 1], [], []>} : vector<8x84xf32>, vector<84x32xf32>, vector<8x32xf32> -> vector<8x32xf32>
    %c536 = arith.constant 536 : index
    %c0_27 = arith.constant 0 : index
    %40 = vector.load %arg2[%c536, %c0_27] : memref<864x128xf32, #tpu.memory_space<vmem>>, vector<1x32xf32>
    %41 = vector.broadcast %40 : vector<1x32xf32> to vector<8x32xf32>
    %42 = arith.addf %39, %41 : vector<8x32xf32>
    %cst_28 = arith.constant 0.000000e+00 : f32
    %43 = vector.broadcast %cst_28 : f32 to vector<8x32xf32>
    %44 = arith.maximumf %42, %43 : vector<8x32xf32>
    %c544 = arith.constant 544 : index
    %c0_29 = arith.constant 0 : index
    %45 = vector.load %arg2[%c544, %c0_29] : memref<864x128xf32, #tpu.memory_space<vmem>>, vector<32x16xf32>
    %cst_30 = arith.constant dense<0.000000e+00> : vector<8x16xf32>
    %46 = tpu.matmul %44, %45, %cst_30 {dimension_numbers = #tpu.dot_dimension_numbers<[1], [0], [0], [1], [0, 0, 1, 1], [], []>} : vector<8x32xf32>, vector<32x16xf32>, vector<8x16xf32> -> vector<8x16xf32>
    %c576 = arith.constant 576 : index
    %c0_31 = arith.constant 0 : index
    %47 = vector.load %arg2[%c576, %c0_31] : memref<864x128xf32, #tpu.memory_space<vmem>>, vector<1x16xf32>
    %48 = vector.broadcast %47 : vector<1x16xf32> to vector<8x16xf32>
    %49 = arith.addf %46, %48 : vector<8x16xf32>
    %c584 = arith.constant 584 : index
    %c0_32 = arith.constant 0 : index
    %50 = vector.load %arg2[%c584, %c0_32] : memref<864x128xf32, #tpu.memory_space<vmem>>, vector<36x100xf32>
    %cst_33 = arith.constant dense<0.000000e+00> : vector<8x100xf32>
    %51 = tpu.matmul %0, %50, %cst_33 {dimension_numbers = #tpu.dot_dimension_numbers<[1], [0], [0], [1], [0, 0, 1, 1], [], []>} : vector<8x36xf32>, vector<36x100xf32>, vector<8x100xf32> -> vector<8x100xf32>
    %c624 = arith.constant 624 : index
    %c0_34 = arith.constant 0 : index
    %52 = vector.load %arg2[%c624, %c0_34] : memref<864x128xf32, #tpu.memory_space<vmem>>, vector<48x100xf32>
    %cst_35 = arith.constant dense<0.000000e+00> : vector<8x100xf32>
    %53 = tpu.matmul %29, %52, %cst_35 {dimension_numbers = #tpu.dot_dimension_numbers<[1], [0], [0], [1], [0, 0, 1, 1], [], []>} : vector<8x48xf32>, vector<48x100xf32>, vector<8x100xf32> -> vector<8x100xf32>
    %54 = arith.addf %51, %53 : vector<8x100xf32>
    %c672 = arith.constant 672 : index
    %c0_36 = arith.constant 0 : index
    %55 = vector.load %arg2[%c672, %c0_36] : memref<864x128xf32, #tpu.memory_space<vmem>>, vector<16x100xf32>
    %cst_37 = arith.constant dense<0.000000e+00> : vector<8x100xf32>
    %56 = tpu.matmul %49, %55, %cst_37 {dimension_numbers = #tpu.dot_dimension_numbers<[1], [0], [0], [1], [0, 0, 1, 1], [], []>} : vector<8x16xf32>, vector<16x100xf32>, vector<8x100xf32> -> vector<8x100xf32>
    %57 = arith.addf %54, %56 : vector<8x100xf32>
    %c688 = arith.constant 688 : index
    %c0_38 = arith.constant 0 : index
    %58 = vector.load %arg2[%c688, %c0_38] : memref<864x128xf32, #tpu.memory_space<vmem>>, vector<19x100xf32>
    %cst_39 = arith.constant dense<0.000000e+00> : vector<8x100xf32>
    %59 = tpu.matmul %12, %58, %cst_39 {dimension_numbers = #tpu.dot_dimension_numbers<[1], [0], [0], [1], [0, 0, 1, 1], [], []>} : vector<8x19xf32>, vector<19x100xf32>, vector<8x100xf32> -> vector<8x100xf32>
    %60 = arith.mulf %57, %59 : vector<8x100xf32>
    %c712 = arith.constant 712 : index
    %c0_40 = arith.constant 0 : index
    %61 = vector.load %arg2[%c712, %c0_40] : memref<864x128xf32, #tpu.memory_space<vmem>>, vector<100x32xf32>
    %cst_41 = arith.constant dense<0.000000e+00> : vector<8x32xf32>
    %62 = tpu.matmul %60, %61, %cst_41 {dimension_numbers = #tpu.dot_dimension_numbers<[1], [0], [0], [1], [0, 0, 1, 1], [], []>} : vector<8x100xf32>, vector<100x32xf32>, vector<8x32xf32> -> vector<8x32xf32>
    %c816 = arith.constant 816 : index
    %c0_42 = arith.constant 0 : index
    %63 = vector.load %arg2[%c816, %c0_42] : memref<864x128xf32, #tpu.memory_space<vmem>>, vector<1x32xf32>
    %64 = vector.broadcast %63 : vector<1x32xf32> to vector<8x32xf32>
    %65 = arith.addf %62, %64 : vector<8x32xf32>
    %cst_43 = arith.constant 0.000000e+00 : f32
    %66 = vector.broadcast %cst_43 : f32 to vector<8x32xf32>
    %67 = arith.maximumf %65, %66 : vector<8x32xf32>
    %c824 = arith.constant 824 : index
    %c0_44 = arith.constant 0 : index
    %68 = vector.load %arg2[%c824, %c0_44] : memref<864x128xf32, #tpu.memory_space<vmem>>, vector<32x16xf32>
    %cst_45 = arith.constant dense<0.000000e+00> : vector<8x16xf32>
    %69 = tpu.matmul %67, %68, %cst_45 {dimension_numbers = #tpu.dot_dimension_numbers<[1], [0], [0], [1], [0, 0, 1, 1], [], []>} : vector<8x32xf32>, vector<32x16xf32>, vector<8x16xf32> -> vector<8x16xf32>
    %c856 = arith.constant 856 : index
    %c0_46 = arith.constant 0 : index
    %70 = vector.load %arg2[%c856, %c0_46] : memref<864x128xf32, #tpu.memory_space<vmem>>, vector<1x16xf32>
    %71 = vector.broadcast %70 : vector<1x16xf32> to vector<8x16xf32>
    %72 = arith.addf %69, %71 : vector<8x16xf32>
    %cst_47 = arith.constant 0.000000e+00 : f32
    %73 = vector.broadcast %cst_47 : f32 to vector<8x128xf32>
    %c0_48 = arith.constant 0 : index
    %c0_49 = arith.constant 0 : index
    %74 = vector.load %arg3[%c0_48, %c0_49] : memref<8x128xf32, #tpu.memory_space<vmem>>, vector<8x128xf32>
    tpu.vector_store %arg3[%c0_48, %c0_49], %73 {strides = array<i32>} : memref<8x128xf32, #tpu.memory_space<vmem>>, vector<8x128xf32>,
    %c0_50 = arith.constant 0 : index
    %c0_51 = arith.constant 0 : index
    %75 = vector.load %arg3[%c0_50, %c0_51] : memref<8x128xf32, #tpu.memory_space<vmem>>, vector<8x48xf32>
    tpu.vector_store %arg3[%c0_50, %c0_51], %29 {strides = array<i32>} : memref<8x128xf32, #tpu.memory_space<vmem>>, vector<8x48xf32>,
    %c0_52 = arith.constant 0 : index
    %c48_53 = arith.constant 48 : index
    %76 = vector.load %arg3[%c0_52, %c48_53] : memref<8x128xf32, #tpu.memory_space<vmem>>, vector<8x16xf32>
    tpu.vector_store %arg3[%c0_52, %c48_53], %49 {strides = array<i32>} : memref<8x128xf32, #tpu.memory_space<vmem>>, vector<8x16xf32>,
    %c0_54 = arith.constant 0 : index
    %c64 = arith.constant 64 : index
    %77 = vector.load %arg3[%c0_54, %c64] : memref<8x128xf32, #tpu.memory_space<vmem>>, vector<8x16xf32>
    tpu.vector_store %arg3[%c0_54, %c64], %72 {strides = array<i32>} : memref<8x128xf32, #tpu.memory_space<vmem>>, vector<8x16xf32>,
    %c0_55 = arith.constant 0 : index
    %c80_56 = arith.constant 80 : index
    %78 = vector.load %arg3[%c0_55, %c80_56] : memref<8x128xf32, #tpu.memory_space<vmem>>, vector<8x19xf32>
    tpu.vector_store %arg3[%c0_55, %c80_56], %12 {strides = array<i32>} : memref<8x128xf32, #tpu.memory_space<vmem>>, vector<8x19xf32>,
    return
  }
  func.func @transform_0(%arg0: i32) -> (i32, i32) {
    %c0_i32 = arith.constant 0 : i32
    %c0_i32_0 = arith.constant 0 : i32
    return %arg0, %c0_i32 : i32, i32
  }
  func.func @transform_1(%arg0: i32) -> (i32, i32) {
    %c0_i32 = arith.constant 0 : i32
    %c0_i32_0 = arith.constant 0 : i32
    %c0_i32_1 = arith.constant 0 : i32
    return %c0_i32, %c0_i32_0 : i32, i32
  }
  func.func @transform_2(%arg0: i32) -> (i32, i32) {
    %c0_i32 = arith.constant 0 : i32
    %c0_i32_0 = arith.constant 0 : i32
    return %arg0, %c0_i32 : i32, i32
  }
}

</mosaic_0001>

<bundles_post_ra>
// kernel: tpu_custom_call.1
= control target key start
LH: loop header
LB: loop body
LE: loop exit
PB: predicated region body
PF: predicated region fallthrough
CT: control target
= control target key end

     0   :  { %7 = vsyncpa [#allocation3], 0  ;;  %s2168_s0 = inlined_call_operand.hbm [shape: f32[8,36], index: 0, kind: input, shape index: {}]   ;;  %s2169_s1 = inlined_call_operand.hbm [shape: f32[864,128], index: 1, kind: input, shape index: {}]   ;;  %s2170_s2 = inlined_call_operand.hbm [shape: f32[8,128], index: 2, kind: output, shape index: {}]  }
   0x1   :  { %8 = vsyncpa [#allocation6], 0 }
   0x2   :  { %9 = vsyncpa [#allocation4], 0  ;;  %s1960_s9 = smov [#allocation2]   ;;  %s1961_s11 = smov [#allocation5]  }
   0x3   :  { %s16_s10 = sshll.u32 %s1960_s9, 4  ;;  %s25_s12 = sshll.u32 %s1961_s11, 4  ;;  %s17_s10 = int_to_ptr.vmem [resolvable:$true] %s16_s10  ;;  %s26_s12 = int_to_ptr.vmem [resolvable:$true] %s25_s12 }
   0x4   :  { %s1902_s13 = scalar_lea.vmem %s17_s10, 128  ;;  %p1907_p1 = scmp.lt.s32.totalorder %s17_s10, %s17_s10 }
   0x5   :  { %p1903_p0 = scmp.ne.s32.totalorder %s17_s10, %s1902_s13  ;;  %p1908_p2 = scmp.lt.s32.totalorder %s1902_s13, %s1902_s13 }
   0x7   :  { %p1909_p3 = por %p1908_p2, %p1907_p1 }
   0x9   :  { %p1910_p4 = pnand %p1909_p3, %p1903_p0 }
   0xb   :  { %1913 = shalt.err (!%p1910_p4)
}
   0xc   :  { %19 = dma.hbm_to_vmem [thread:$0]  %s2168_s0, 128, %s17_s10, [#allocation3]  }
   0xd   :  { %s1922_s16 = scalar_lea.vmem %s26_s12, 13824  ;;  %p1927_p6 = scmp.lt.s32.totalorder %s26_s12, %s26_s12 }
   0xe   :  { %p1923_p5 = scmp.ne.s32.totalorder %s26_s12, %s1922_s16  ;;  %p1928_p7 = scmp.lt.s32.totalorder %s1922_s16, %s1922_s16 }
  0x10   :  { %p1929_p8 = por %p1928_p7, %p1927_p6 }
  0x12   :  { %p1930_p9 = pnand %p1929_p8, %p1923_p5 }
  0x14   :  { %1933 = shalt.err (!%p1930_p9)
}
  0x15   :  { %s1962_s17 = smov 128   ;;  %s1963_s18 = smov 8  }
  0x16   :  { %31 = dma.hbm_to_vmem [thread:$0]  %s2169_s1, 13824, %s26_s12, [#allocation6], %s1962_s17, %s1962_s17, %s1963_s18  }
  0x17   :  { %1954 = dma.done.wait [#allocation3], 128  }
  0x18   :  { %1955 = vsyncadd [#allocation3], 4294967168 }
  0x19   :  { %1956 = dma.done.wait [#allocation6], 13824  }
  0x1a   :  { %1957 = vsyncadd [#allocation6], 4294953472  ;;  %v1964_v0 = vmov 0.0   ;;  %vm1965_vm0 = vmmov 0   ;;  %vm53_vm1 = vcmask 1043456   ;;  %v42_v2 = vld [vmem:[#allocation5 + $0x18] sm:$0xff] }
  0x1b   :  { %1633 = vmatprep.subr.mxu0 %v1964_v0  ;;  %1448 = vst [vmem:[#allocation7] sm:$0xff] %v1964_v0  ;;  %1643 = vmatprep.mubr.msk.f32.mxu0 %vm1965_vm0, %v1964_v0  ;;  %v43_v1 = vld [vmem:[#allocation5 + $0x20] sm:$0xf]  ;;  %v41_v3 = vld [vmem:[#allocation5 + $0x10] sm:$0xff]  ;;  %v40_v4 = vld [vmem:[#allocation5 + $0x8] sm:$0xff]  ;;  %vm49_vm2 = vcmask 293888  }
  0x1c   :  { %1657 = vmatprep.subr.mxu1 %v1964_v0  ;;  %1667 = vmatprep.mubr.msk.f32.mxu1 %vm1965_vm0, %v1964_v0  ;;  %v39_v5 = vld [vmem:[#allocation5] sm:$0xff]  ;;  %v2002_v6 = vld [vmem:[#allocation2] sm:$0xff]  ;;  %v131_v7 = vld [vmem:[#allocation5 + $0x48] sm:$0xff]  ;;  %vm137_vm3 = vcmask 261120   ;;  %vm296_vm4 = vcmask 1042432   ;;  %vm292_vm5 = vcmask 154624  }
  0x1d   :  { %1634 = vmatpush3.msk.msra.mxu0 %vm53_vm1, %v43_v1  ;;  %v130_v8 = vld [vmem:[#allocation5 + $0x40] sm:$0xff]  ;;  %v129_v9 = vld [vmem:[#allocation5 + $0x38] sm:$0xff]  ;;  %v128_v10 = vld [vmem:[#allocation5 + $0x30] sm:$0xff]  ;;  %s1966_s0 = smov 80   ;;  %vm385_vm6 = vcmask 588800   ;;  %vm477_vm7 = vcmask 785408  }
  0x1e   :  { %1635 = vmatprep.subr.mxu0 %v1964_v0  ;;  %v215_v11 = vld [vmem:[#allocation5 + $0x78] sm:$0xf]  ;;  %v214_v12 = vld [vmem:[#allocation5 + $0x70] sm:$0xff]  ;;  %v213_v13 = vld [vmem:[#allocation5 + $0x68] sm:$0xff]  ;;  %vm562_vm8 = vcmask 392192   ;;  %vm802_vm9 = vcmask 687104  }
  0x1f   :  { %1636 = vmatpush3.msra.mxu0 %v42_v2  ;;  %1658 = vmatpush3.msk.msra.mxu1 %vm53_vm1, %v215_v11  ;;  %v212_v14 = vld [vmem:[#allocation5 + $0x60] sm:$0xff]  ;;  %v1482_v15 = vld [vmem:[#allocation5 + $0x28] ss:$0 sm:$0xff]  ;;  %v291_v20 = vld [vmem:[#allocation5 + $0x90] sm:$0x7]  ;;  %vm1118_vm10 = vcmask 130048  }
  0x20   :  { %1637 = vmatprep.subr.mxu0 %v1964_v0  ;;  %1659 = vmatprep.subr.mxu1 %v1964_v0  ;;  %v211_v21 = vld [vmem:[#allocation5 + $0x58] sm:$0xff]  ;;  %v290_v22 = vld [vmem:[#allocation5 + $0x88] sm:$0xff]  ;;  %v289_v23 = vld [vmem:[#allocation5 + $0x80] sm:$0xff]  ;;  %s1967_s1 = smov 48   ;;  %vm1453_vm11 = vcmask 523648   ;;  %vm1288_vm12 = vcmask 818176  }
  0x21   :  { %1638 = vmatpush3.msra.mxu0 %v41_v3  ;;  %1660 = vmatpush3.msra.mxu1 %v214_v12  ;;  %v1485_v24 = vld [vmem:[#allocation5 + $0x50] ss:$0 sm:$0xff]  ;;  %v379_v27 = vld [vmem:[#allocation5 + $0xd8] sm:$0xff]  ;;  %v377_v30 = vld [vmem:[#allocation5 + $0xc8] sm:$0xff]  ;;  %s1968_s21 = smov 64   ;;  %s1969_s22 = smov [#allocation7]  }
  0x22   :  { %1639 = vmatprep.subr.mxu0 %v1964_v0  ;;  %1661 = vmatprep.subr.mxu1 %v1964_v0  ;;  %v378_v29 = vld [vmem:[#allocation5 + $0xd0] sm:$0xff]  ;;  %v376_v31 = vld [vmem:[#allocation5 + $0xc0] sm:$0xff]  ;;  %v375_v32 = vld [vmem:[#allocation5 + $0xb8] sm:$0xff]  ;;  %s1472_s23 = sshll.u32 %s1969_s22, 4  ;;  %vm1459_vm13 = vcmask 654848   ;;  %vm1464_vm14 = vcmask 810624   ;;  %s1473_s23 = int_to_ptr.vmem [resolvable:$true] %s1472_s23 }
  0x23   :  { %1640 = vmatpush3.msra.mxu0 %v40_v4  ;;  %1662 = vmatpush3.msra.mxu1 %v213_v13  ;;  %v374_v33 = vld [vmem:[#allocation5 + $0xb0] sm:$0xff]  ;;  %v373_v34 = vld [vmem:[#allocation5 + $0xa8] sm:$0xff]  ;;  %v372_v36 = vld [vmem:[#allocation5 + $0xa0] sm:$0xff]  ;;  %s1934_s24 = scalar_lea.vmem %s1473_s23, 128  ;;  %p1939_p11 = scmp.lt.s32.totalorder %s1473_s23, %s1473_s23 }
  0x24   :  { %1641 = vmatprep.subr.mxu0 %v1964_v0  ;;  %1663 = vmatprep.subr.mxu1 %v1964_v0  ;;  %v371_v38 = vld [vmem:[#allocation5 + $0x98] sm:$0xff]  ;;  %v471_v39 = vld [vmem:[#allocation5 + $0x140] sm:$0xff]  ;;  %v469_v41 = vld [vmem:[#allocation5 + $0x130] sm:$0xff]  ;;  %p1935_p10 = scmp.ne.s32.totalorder %s1473_s23, %s1934_s24  ;;  %p1940_p12 = scmp.lt.s32.totalorder %s1934_s24, %s1934_s24 }
  0x25   :  { %1642 = vmatpush3.msra.mxu0 %v39_v5  ;;  %1664 = vmatpush3.msra.mxu1 %v212_v14  ;;  %v470_v40 = vld [vmem:[#allocation5 + $0x138] sm:$0xff]  ;;  %v468_v42 = vld [vmem:[#allocation5 + $0x128] sm:$0xff]  ;;  %v467_v43 = vld [vmem:[#allocation5 + $0x120] sm:$0xff] }
  0x26   :  { %1644 = vmatmul.mubr.msk.f32.vlgmr.msra.gmra.mxu0 %vm49_vm2, %v2002_v6  ;;  %1646 = vmatprep.subr.mxu0 %v1964_v0  ;;  %v466_v44 = vld [vmem:[#allocation5 + $0x118] sm:$0xff]  ;;  %v465_v45 = vld [vmem:[#allocation5 + $0x110] sm:$0xff]  ;;  %v464_v46 = vld [vmem:[#allocation5 + $0x108] sm:$0xff]  ;;  %p1941_p13 = por %p1940_p12, %p1939_p11 }
  0x27   :  { %1647 = vmatpush3.msra.mxu0 %v131_v7  ;;  %1654 = vmatprep.mubr.msk.f32.mxu0 %vm1965_vm0, %v1964_v0  ;;  %v463_v47 = vld [vmem:[#allocation5 + $0x100] sm:$0xff]  ;;  %v462_v51 = vld [vmem:[#allocation5 + $0xf8] sm:$0xff]  ;;  %v461_v52 = vld [vmem:[#allocation5 + $0xf0] sm:$0xff] }
  0x28   :  { %1648 = vmatprep.subr.mxu0 %v1964_v0  ;;  %1665 = vmatprep.subr.mxu1 %v1964_v0  ;;  %v460_v53 = vld [vmem:[#allocation5 + $0xe8] sm:$0xff]  ;;  %v561_v54 = vld [vmem:[#allocation5 + $0x1a0] sm:$0xff]  ;;  %v560_v55 = vld [vmem:[#allocation5 + $0x198] sm:$0xff]  ;;  %p1942_p0 = pnand %p1941_p13, %p1935_p10 }
  0x29   :  { %1649 = vmatpush3.msra.mxu0 %v130_v8  ;;  %1666 = vmatpush3.msra.mxu1 %v211_v21  ;;  %v559_v56 = vld [vmem:[#allocation5 + $0x190] sm:$0xff]  ;;  %v558_v57 = vld [vmem:[#allocation5 + $0x188] sm:$0xff]  ;;  %v557_v58 = vld [vmem:[#allocation5 + $0x180] sm:$0xff] }
  0x2a   :  { %1650 = vmatprep.subr.mxu0 %v1964_v0  ;;  %1668 = vmatmul.mubr.msk.f32.vlgmr.msra.gmra.mxu1 %vm49_vm2, %v2002_v6  ;;  %v1491_v59 = vld [vmem:[#allocation5 + $0xe0] ss:$0 sm:$0xff]  ;;  %v555_v1 = vld [vmem:[#allocation5 + $0x170] sm:$0xf]  ;;  %v554_v2 = vld [vmem:[#allocation5 + $0x168] sm:$0xff] }
  0x2b   :  { %1651 = vmatpush3.msra.mxu0 %v129_v9  ;;  %1700 = vmatprep.subr.mxu1 %v1964_v0  ;;  %v553_v3 = vld [vmem:[#allocation5 + $0x160] sm:$0xff]  ;;  %v552_v4 = vld [vmem:[#allocation5 + $0x158] sm:$0xff]  ;;  %v551_v7 = vld [vmem:[#allocation5 + $0x150] sm:$0xff] }
  0x2c   :  { %1652 = vmatprep.subr.mxu0 %v1964_v0  ;;  %1724 = vmatprep.mubr.msk.f32.mxu1 %vm1965_vm0, %v1964_v0  ;;  %v556_v5 = vld [vmem:[#allocation5 + $0x178] sm:$0xff]  ;;  %v1493_v8 = vld [vmem:[#allocation5 + $0x148] ss:$0 sm:$0xff]  ;;  %v710_v13 = vld [vmem:[#allocation5 + $0x1b0] sm:$0xff] }
  0x2d   :  { %1653 = vmatpush3.msra.mxu0 %v128_v10  ;;  %1701 = vmatpush3.msra.mxu1 %v471_v39  ;;  %v711_v11 = vld [vmem:[#allocation5 + $0x1b8] sm:$0x7]  ;;  %v709_v14 = vld [vmem:[#allocation5 + $0x1a8] sm:$0xff]  ;;  %v790_v21 = vld [vmem:[#allocation5 + $0x1e0] sm:$0xff] }
  0x2e   :  { %1670 = vmatprep.subr.mxu0 %v1964_v0  ;;  %1702 = vmatprep.subr.mxu1 %v1964_v0  ;;  %v1117_v39 = vld [vmem:[#allocation5 + $0x2a8] sm:$0xff] }
  0x2f   :  { %1703 = vmatpush3.msra.mxu1 %v470_v40  ;;  %v1500_v40 = vld [vmem:[#allocation5 + $0x218] ss:$0 sm:$0xff] }
  0x30   :  { %1704 = vmatprep.subr.mxu1 %v1964_v0 }
  0x31   :  { %1705 = vmatpush3.msra.mxu1 %v469_v41 }
  0x32   :  { %1706 = vmatprep.subr.mxu1 %v1964_v0 }
  0x33   :  { %1707 = vmatpush3.msra.mxu1 %v468_v42 }
  0x34   :  { %1708 = vmatprep.subr.mxu1 %v1964_v0 }
  0x35   :  { %1709 = vmatpush3.msra.mxu1 %v467_v43 }
  0x36   :  { %1710 = vmatprep.subr.mxu1 %v1964_v0 }
  0x37   :  { %1711 = vmatpush3.msra.mxu1 %v466_v44 }
  0x38   :  { %1712 = vmatprep.subr.mxu1 %v1964_v0 }
  0x39   :  { %1713 = vmatpush3.msra.mxu1 %v465_v45  ;;  %v972_v45 = vld [vmem:[#allocation5 + $0x298] sm:$0xff] }
  0x3a   :  { %1714 = vmatprep.subr.mxu1 %v1964_v0 }
  0x3b   :  { %1715 = vmatpush3.msra.mxu1 %v464_v46  ;;  %v971_v46 = vld [vmem:[#allocation5 + $0x290] sm:$0xff] }
  0x3c   :  { %1716 = vmatprep.subr.mxu1 %v1964_v0 }
  0x3d   :  { %1717 = vmatpush3.msra.mxu1 %v463_v47  ;;  %v970_v47 = vld [vmem:[#allocation5 + $0x288] sm:$0xff] }
  0x3e   :  { %1718 = vmatprep.subr.mxu1 %v1964_v0 }
  0x3f   :  { %1719 = vmatpush3.msra.mxu1 %v462_v51  ;;  %v966_v51 = vld [vmem:[#allocation5 + $0x268] sm:$0xf] }
  0x40   :  { %1720 = vmatprep.subr.mxu1 %v1964_v0 }
  0x41   :  { %1721 = vmatpush3.msra.mxu1 %v461_v52  ;;  %v965_v52 = vld [vmem:[#allocation5 + $0x260] sm:$0xff] }
  0x42   :  { %1722 = vmatprep.subr.mxu1 %v1964_v0 }
  0x43   :  { %1723 = vmatpush3.msra.mxu1 %v460_v53  ;;  %v964_v53 = vld [vmem:[#allocation5 + $0x258] sm:$0xff] }
  0x44   :  { %1742 = vmatprep.subr.mxu1 %v1964_v0 }
  0xe6   :  { %v123_v16 = vpop.f32.mrf.mxu0 }
  0xe7   :  { %v124_v17 = vadd.f32 %v1482_v15, %v123_v16  ;;  %v796_v15 = vld [vmem:[#allocation5 + $0x210] sm:$0xf]  ;;  %v795_v16 = vld [vmem:[#allocation5 + $0x208] sm:$0xff] }
  0xe8   :  { %v1645_v18 = vpop.f32.mrf.mxu0 }
  0xe9   :  { %v127_v19 = vmax.f32 %v124_v17, 0.0  ;;  %v794_v17 = vld [vmem:[#allocation5 + $0x200] sm:$0xff]  ;;  %v793_v18 = vld [vmem:[#allocation5 + $0x1f8] sm:$0xff] }
  0xea   :  { %v285_v35 = vpop.f32.mrf.mxu1 }
  0xeb   :  { %1655 = vmatmul.mubr.msk.f32.vlgmr.msra.gmra.mxu0 %vm137_vm3, %v127_v19  ;;  %v792_v19 = vld [vmem:[#allocation5 + $0x1f0] sm:$0xff] }
  0xec   :  { %1671 = vmatpush3.msk.msra.mxu0 %vm296_vm4, %v291_v20  ;;  %1676 = vmatprep.mubr.msk.f32.mxu0 %vm1965_vm0, %v1964_v0  ;;  %v1669_v37 = vpop.f32.mrf.mxu1  ;;  %v791_v20 = vld [vmem:[#allocation5 + $0x1e8] sm:$0xff] }
  0xed   :  { %1672 = vmatprep.subr.mxu0 %v1964_v0  ;;  %v881_v37 = vld [vmem:[#allocation5 + $0x228] sm:$0xff] }
  0xee   :  { %1673 = vmatpush3.msra.mxu0 %v290_v22 }
  0xef   :  { %1674 = vmatprep.subr.mxu0 %v1964_v0 }
  0xf0   :  { %1675 = vmatpush3.msra.mxu0 %v289_v23  ;;  %v789_v23 = vld [vmem:[#allocation5 + $0x1d8] sm:$0xff] }
  0xf1   :  { %1679 = vmatprep.subr.mxu0 %v1964_v0 }
 0x1ab   :  { %v207_v25 = vpop.f32.mrf.mxu0 }
 0x1ac   :  { %v2031_v26 = vadd.f32 %v1485_v24, %v207_v25  ;;  %v788_v25 = vld [vmem:[#allocation5 + $0x1d0] sm:$0xff] }
 0x1ad   :  { %v1656_v28 = vpop.f32.mrf.mxu0 }
 0x1ae   :  { %1461 = vrot.lane.b32.xlu1 %v2031_v26, %s1966_s0  ;;  %1677 = vmatmul.mubr.msk.f32.vlgmr.msra.gmra.mxu0 %vm292_vm5, %v2031_v26  ;;  %v786_v28 = vld [vmem:[#allocation5 + $0x1c0] sm:$0xff] }
 0x1af   :  { %1680 = vmatpush3.msra.mxu0 %v379_v27  ;;  %1697 = vmatprep.mubr.msk.f32.mxu0 %vm1965_vm0, %v1964_v0  ;;  %v787_v27 = vld [vmem:[#allocation5 + $0x1c8] sm:$0xff] }
 0x1b0   :  { %1681 = vmatprep.subr.mxu0 %v1964_v0 }
 0x1b1   :  { %1682 = vmatpush3.msra.mxu0 %v378_v29  ;;  %v883_v29 = vld [vmem:[#allocation5 + $0x238] sm:$0xff] }
 0x1b2   :  { %1683 = vmatprep.subr.mxu0 %v1964_v0 }
 0x1b3   :  { %1684 = vmatpush3.msra.mxu0 %v377_v30  ;;  %v882_v30 = vld [vmem:[#allocation5 + $0x230] sm:$0xff] }
 0x1b4   :  { %1685 = vmatprep.subr.mxu0 %v1964_v0 }
 0x1b5   :  { %1686 = vmatpush3.msra.mxu0 %v376_v31 }
 0x1b6   :  { %1687 = vmatprep.subr.mxu0 %v1964_v0 }
 0x1b7   :  { %1688 = vmatpush3.msra.mxu0 %v375_v32 }
 0x1b8   :  { %1689 = vmatprep.subr.mxu0 %v1964_v0 }
 0x1b9   :  { %1690 = vmatpush3.msra.mxu0 %v374_v33 }
 0x1ba   :  { %1691 = vmatprep.subr.mxu0 %v1964_v0 }
 0x1bb   :  { %1692 = vmatpush3.msra.mxu0 %v373_v34 }
 0x1bc   :  { %1693 = vmatprep.subr.mxu0 %v1964_v0 }
 0x1bd   :  { %1694 = vmatpush3.msra.mxu0 %v372_v36 }
 0x1be   :  { %1695 = vmatprep.subr.mxu0 %v1964_v0 }
 0x1bf   :  { %1696 = vmatpush3.msra.mxu0 %v371_v38  ;;  %v880_v38 = vld [vmem:[#allocation5 + $0x220] sm:$0xff] }
 0x1c0   :  { %1727 = vmatprep.subr.mxu0 %v1964_v0 }
 0x26e   :  { %v366_v48 = vpop.f32.mrf.mxu0 }
 0x26f   :  { %v370_v49 = vmul.f32 %v366_v48, %v285_v35  ;;  %v969_v48 = vld [vmem:[#allocation5 + $0x280] sm:$0xff] }
 0x270   :  { %v1678_v50 = vpop.f32.mrf.mxu0 }
 0x271   :  { %1698 = vmatmul.mubr.msk.f32.vlgmr.msra.gmra.mxu0 %vm385_vm6, %v370_v49  ;;  %v968_v49 = vld [vmem:[#allocation5 + $0x278] sm:$0xff]  ;;  %v967_v50 = vld [vmem:[#allocation5 + $0x270] sm:$0xff] }
 0x272   :  { %1739 = vmatprep.mubr.msk.f32.mxu0 %vm1965_vm0, %v1964_v0  ;;  %1728 = vmatpush3.msra.mxu0 %v561_v54  ;;  %v963_v54 = vld [vmem:[#allocation5 + $0x250] sm:$0xff] }
 0x273   :  { %1729 = vmatprep.subr.mxu0 %v1964_v0 }
 0x274   :  { %1730 = vmatpush3.msra.mxu0 %v560_v55  ;;  %v962_v55 = vld [vmem:[#allocation5 + $0x248] sm:$0xff] }
 0x275   :  { %1731 = vmatprep.subr.mxu0 %v1964_v0 }
 0x276   :  { %1732 = vmatpush3.msra.mxu0 %v559_v56  ;;  %v1116_v56 = vld [vmem:[#allocation5 + $0x2a0] sm:$0xff] }
 0x277   :  { %1733 = vmatprep.subr.mxu0 %v1964_v0 }
 0x278   :  { %1734 = vmatpush3.msra.mxu0 %v558_v57  ;;  %v1282_v57 = vld [vmem:[#allocation5 + $0x328] sm:$0xf] }
 0x279   :  { %1735 = vmatprep.subr.mxu0 %v1964_v0 }
 0x27a   :  { %1736 = vmatpush3.msra.mxu0 %v557_v58  ;;  %v1281_v58 = vld [vmem:[#allocation5 + $0x320] sm:$0xff] }
 0x27b   :  { %1737 = vmatprep.subr.mxu0 %v1964_v0 }
 0x27c   :  { %1738 = vmatpush3.msra.mxu0 %v556_v5  ;;  %v1194_v5 = vld [vmem:[#allocation5 + $0x2b8] sm:$0xff] }
 0x27d   :  { %1755 = vmatprep.subr.mxu0 %v1964_v0 }
 0x331   :  { %v455_v60 = vpop.f32.mrf.mxu0 }
 0x332   :  { %v456_v61 = vadd.f32 %v1491_v59, %v455_v60  ;;  %v1280_v59 = vld [vmem:[#allocation5 + $0x318] sm:$0xff]  ;;  %v1278_v60 = vld [vmem:[#allocation5 + $0x308] sm:$0xff] }
 0x333   :  { %v1699_v62 = vpop.f32.mrf.mxu0 }
 0x334   :  { %v459_v63 = vmax.f32 %v456_v61, 0.0  ;;  %v1503_v61 = vld [vmem:[#allocation5 + $0x240] ss:$0 sm:$0xff] }
 0x335   :  { %v1277_v62 = vld [vmem:[#allocation5 + $0x300] sm:$0xff] }
 0x336   :  { %1725 = vmatmul.mubr.msk.f32.vlgmr.msra.gmra.mxu1 %vm477_vm7, %v459_v63 }
 0x337   :  { %1743 = vmatpush3.msk.msra.mxu1 %vm53_vm1, %v555_v1  ;;  %1752 = vmatprep.mubr.msk.f32.mxu1 %vm1965_vm0, %v1964_v0 }
 0x338   :  { %1744 = vmatprep.subr.mxu1 %v1964_v0 }
 0x339   :  { %1745 = vmatpush3.msra.mxu1 %v554_v2  ;;  %v1195_v2 = vld [vmem:[#allocation5 + $0x2c0] sm:$0x7] }
 0x33a   :  { %1746 = vmatprep.subr.mxu1 %v1964_v0 }
 0x33b   :  { %1747 = vmatpush3.msra.mxu1 %v553_v3 }
 0x33c   :  { %1748 = vmatprep.subr.mxu1 %v1964_v0 }
 0x33d   :  { %1749 = vmatpush3.msra.mxu1 %v552_v4  ;;  %v1276_v4 = vld [vmem:[#allocation5 + $0x2f8] sm:$0xff] }
 0x33e   :  { %1750 = vmatprep.subr.mxu1 %v1964_v0 }
 0x33f   :  { %1751 = vmatpush3.msra.mxu1 %v551_v7  ;;  %v1275_v7 = vld [vmem:[#allocation5 + $0x2f0] sm:$0xff] }
 0x340   :  { %1753 = vmatmul.mubr.msk.f32.vlgmr.msra.gmra.mxu1 %vm49_vm2, %v2002_v6  ;;  %1789 = vmatprep.subr.mxu1 %v1964_v0 }
 0x341   :  { %1797 = vmatprep.mubr.msk.f32.mxu1 %vm1965_vm0, %v1964_v0  ;;  %1790 = vmatpush3.msra.mxu1 %v883_v29  ;;  %v1366_v29 = vld [vmem:[#allocation5 + $0x338] sm:$0xff] }
 0x342   :  { %1791 = vmatprep.subr.mxu1 %v1964_v0 }
 0x343   :  { %1792 = vmatpush3.msra.mxu1 %v882_v30  ;;  %v1511_v30 = vld [vmem:[#allocation5 + $0x330] ss:$0 sm:$0xff] }
 0x344   :  { %1793 = vmatprep.subr.mxu1 %v1964_v0 }
 0x345   :  { %1794 = vmatpush3.msra.mxu1 %v881_v37 }
 0x346   :  { %1795 = vmatprep.subr.mxu1 %v1964_v0 }
 0x347   :  { %1796 = vmatpush3.msra.mxu1 %v880_v38 }
 0x348   :  { %1800 = vmatprep.subr.mxu1 %v1964_v0 }
 0x3f6   :  { %v547_v9 = vpop.f32.mrf.mxu1 }
 0x3f7   :  { %v2079_v10 = vadd.f32 %v1493_v8, %v547_v9  ;;  %v1193_v8 = vld [vmem:[#allocation5 + $0x2b0] sm:$0xff]  ;;  %v1274_v9 = vld [vmem:[#allocation5 + $0x2e8] sm:$0xff] }
 0x3f8   :  { %v1726_v12 = vpop.f32.mrf.mxu1 }
 0x3f9   :  { %1740 = vmatmul.mubr.msk.f32.vlgmr.msra.gmra.mxu0 %vm562_vm8, %v2079_v10  ;;  %1449 = vst.msk [vmem:[#allocation7] sm:$0xff] %vm562_vm8, %v2079_v10 }
 0x3fa   :  { %1756 = vmatpush3.msk.msra.mxu0 %vm296_vm4, %v711_v11  ;;  %1761 = vmatprep.mubr.msk.f32.mxu0 %vm1965_vm0, %v1964_v0 }
 0x3fb   :  { %1757 = vmatprep.subr.mxu0 %v1964_v0 }
 0x3fc   :  { %1758 = vmatpush3.msra.mxu0 %v710_v13 }
 0x3fd   :  { %1759 = vmatprep.subr.mxu0 %v1964_v0 }
 0x3fe   :  { %1760 = vmatpush3.msra.mxu0 %v709_v14 }
 0x3ff   :  { %1762 = vmatmul.mubr.msk.f32.vlgmr.msra.gmra.mxu0 %vm292_vm5, %v2031_v26  ;;  %1764 = vmatprep.subr.mxu0 %v1964_v0 }
 0x400   :  { %1765 = vmatpush3.msk.msra.mxu0 %vm53_vm1, %v796_v15  ;;  %1786 = vmatprep.mubr.msk.f32.mxu0 %vm1965_vm0, %v1964_v0  ;;  %v705_v22 = vpop.f32.mrf.mxu1  ;;  %v1273_v15 = vld [vmem:[#allocation5 + $0x2e0] sm:$0xff] }
 0x401   :  { %1766 = vmatprep.subr.mxu0 %v1964_v0 }
 0x402   :  { %1767 = vmatpush3.msra.mxu0 %v795_v16  ;;  %v1754_v24 = vpop.f32.mrf.mxu1  ;;  %v1272_v16 = vld [vmem:[#allocation5 + $0x2d8] sm:$0xff] }
 0x403   :  { %1768 = vmatprep.subr.mxu0 %v1964_v0 }
 0x404   :  { %1769 = vmatpush3.msra.mxu0 %v794_v17  ;;  %v1270_v17 = vld [vmem:[#allocation5 + $0x2c8] sm:$0xff] }
 0x405   :  { %1770 = vmatprep.subr.mxu0 %v1964_v0 }
 0x406   :  { %1771 = vmatpush3.msra.mxu0 %v793_v18  ;;  %v1369_v18 = vld [vmem:[#allocation5 + $0x350] sm:$0xff] }
 0x407   :  { %1772 = vmatprep.subr.mxu0 %v1964_v0 }
 0x408   :  { %1773 = vmatpush3.msra.mxu0 %v792_v19 }
 0x409   :  { %1774 = vmatprep.subr.mxu0 %v1964_v0 }
 0x40a   :  { %1775 = vmatpush3.msra.mxu0 %v791_v20 }
 0x40b   :  { %1776 = vmatprep.subr.mxu0 %v1964_v0 }
 0x40c   :  { %1777 = vmatpush3.msra.mxu0 %v790_v21 }
 0x40d   :  { %1778 = vmatprep.subr.mxu0 %v1964_v0 }
 0x40e   :  { %1779 = vmatpush3.msra.mxu0 %v789_v23 }
 0x40f   :  { %1780 = vmatprep.subr.mxu0 %v1964_v0 }
 0x410   :  { %1781 = vmatpush3.msra.mxu0 %v788_v25 }
 0x411   :  { %1782 = vmatprep.subr.mxu0 %v1964_v0 }
 0x412   :  { %1783 = vmatpush3.msra.mxu0 %v787_v27  ;;  %v1368_v27 = vld [vmem:[#allocation5 + $0x348] sm:$0xff] }
 0x413   :  { %1784 = vmatprep.subr.mxu0 %v1964_v0 }
 0x414   :  { %1785 = vmatpush3.msra.mxu0 %v786_v28  ;;  %v1367_v28 = vld [vmem:[#allocation5 + $0x340] sm:$0xff] }
 0x415   :  { %1828 = vmatprep.subr.mxu0 %v1964_v0 }
 0x4b9   :  { %v632_v31 = vpop.f32.mrf.mxu0 }
 0x4ba   :  { %v706_v33 = vadd.f32 %v705_v22, %v632_v31 }
 0x4bb   :  { %v1741_v32 = vpop.f32.mrf.mxu0 }
 0x4bf   :  { %v781_v34 = vpop.f32.mrf.mxu0 }
 0x4c0   :  { %v785_v35 = vmul.f32 %v781_v34, %v706_v33 }
 0x4c1   :  { %v1763_v36 = vpop.f32.mrf.mxu0 }
 0x4c2   :  { %1787 = vmatmul.mubr.msk.f32.vlgmr.msra.gmra.mxu0 %vm802_vm9, %v785_v35  ;;  %v1514_v35 = vld [vmem:[#allocation5 + $0x358] ss:$0 sm:$0xff] }
 0x4c3   :  { %1832 = vmatprep.mubr.msk.f32.mxu0 %vm1965_vm0, %v1964_v0  ;;  %1829 = vmatpush3.msra.mxu0 %v1117_v39  ;;  %v1462_v39 = vpop.permute.xlu1 %1461 }
 0x4c4   :  { %1830 = vmatprep.subr.mxu0 %v1964_v0 }
 0x4c5   :  { %1831 = vmatpush3.msra.mxu0 %v1116_v56 }
 0x4c6   :  { %1835 = vmatprep.subr.mxu0 %v1964_v0 }
 0x582   :  { %v875_v41 = vpop.f32.mrf.mxu0 }
 0x583   :  { %v876_v42 = vadd.f32 %v1500_v40, %v875_v41 }
 0x584   :  { %v1788_v43 = vpop.f32.mrf.mxu0 }
 0x585   :  { %v879_v44 = vmax.f32 %v876_v42, 0.0 }
 0x587   :  { %1798 = vmatmul.mubr.msk.f32.vlgmr.msra.gmra.mxu1 %vm137_vm3, %v879_v44 }
 0x588   :  { %1801 = vmatpush3.msra.mxu1 %v972_v45  ;;  %1812 = vmatprep.mubr.msk.f32.mxu1 %vm1965_vm0, %v1964_v0 }
 0x589   :  { %1802 = vmatprep.subr.mxu1 %v1964_v0 }
 0x58a   :  { %1803 = vmatpush3.msra.mxu1 %v971_v46 }
 0x58b   :  { %1804 = vmatprep.subr.mxu1 %v1964_v0 }
 0x58c   :  { %1805 = vmatpush3.msra.mxu1 %v970_v47 }
 0x58d   :  { %1806 = vmatprep.subr.mxu1 %v1964_v0 }
 0x58e   :  { %1807 = vmatpush3.msra.mxu1 %v969_v48 }
 0x58f   :  { %1808 = vmatprep.subr.mxu1 %v1964_v0 }
 0x590   :  { %1809 = vmatpush3.msra.mxu1 %v968_v49 }
 0x591   :  { %1810 = vmatprep.subr.mxu1 %v1964_v0 }
 0x592   :  { %1811 = vmatpush3.msra.mxu1 %v967_v50 }
 0x593   :  { %1813 = vmatmul.mubr.msk.f32.vlgmr.msra.gmra.mxu1 %vm562_vm8, %v2079_v10  ;;  %1815 = vmatprep.subr.mxu1 %v1964_v0 }
 0x594   :  { %1816 = vmatpush3.msk.msra.mxu1 %vm53_vm1, %v966_v51  ;;  %1825 = vmatprep.mubr.msk.f32.mxu1 %vm1965_vm0, %v1964_v0 }
 0x595   :  { %1817 = vmatprep.subr.mxu1 %v1964_v0 }
 0x596   :  { %1818 = vmatpush3.msra.mxu1 %v965_v52 }
 0x597   :  { %1819 = vmatprep.subr.mxu1 %v1964_v0 }
 0x598   :  { %1820 = vmatpush3.msra.mxu1 %v964_v53 }
 0x599   :  { %1821 = vmatprep.subr.mxu1 %v1964_v0 }
 0x59a   :  { %1822 = vmatpush3.msra.mxu1 %v963_v54 }
 0x59b   :  { %1823 = vmatprep.subr.mxu1 %v1964_v0 }
 0x59c   :  { %1824 = vmatpush3.msra.mxu1 %v962_v55 }
 0x59d   :  { %1826 = vmatmul.mubr.msk.f32.vlgmr.msra.gmra.mxu1 %vm49_vm2, %v2002_v6  ;;  %1844 = vmatprep.subr.mxu1 %v1964_v0  ;;  %v1279_v6 = vld [vmem:[#allocation5 + $0x310] sm:$0xff] }
 0x59e   :  { %1870 = vmatprep.mubr.msk.f32.mxu1 %vm1965_vm0, %v1964_v0  ;;  %1845 = vmatpush3.msk.msra.mxu1 %vm53_vm1, %v1282_v57 }
 0x59f   :  { %1846 = vmatprep.subr.mxu1 %v1964_v0 }
 0x5a0   :  { %1847 = vmatpush3.msra.mxu1 %v1281_v58 }
 0x5a1   :  { %1848 = vmatprep.subr.mxu1 %v1964_v0 }
 0x5a2   :  { %1849 = vmatpush3.msra.mxu1 %v1280_v59 }
 0x5a3   :  { %1850 = vmatprep.subr.mxu1 %v1964_v0 }
 0x5a4   :  { %1851 = vmatpush3.msra.mxu1 %v1279_v6 }
 0x5a5   :  { %1852 = vmatprep.subr.mxu1 %v1964_v0 }
 0x5a6   :  { %1853 = vmatpush3.msra.mxu1 %v1278_v60 }
 0x5a7   :  { %1854 = vmatprep.subr.mxu1 %v1964_v0 }
 0x5a8   :  { %1855 = vmatpush3.msra.mxu1 %v1277_v62 }
 0x5a9   :  { %1856 = vmatprep.subr.mxu1 %v1964_v0 }
 0x5aa   :  { %1857 = vmatpush3.msra.mxu1 %v1276_v4 }
 0x5ab   :  { %1858 = vmatprep.subr.mxu1 %v1964_v0 }
 0x5ac   :  { %1859 = vmatpush3.msra.mxu1 %v1275_v7 }
 0x5ad   :  { %1860 = vmatprep.subr.mxu1 %v1964_v0 }
 0x5ae   :  { %1861 = vmatpush3.msra.mxu1 %v1274_v9 }
 0x5af   :  { %1862 = vmatprep.subr.mxu1 %v1964_v0 }
 0x5b0   :  { %1863 = vmatpush3.msra.mxu1 %v1273_v15 }
 0x5b1   :  { %1864 = vmatprep.subr.mxu1 %v1964_v0 }
 0x5b2   :  { %1865 = vmatpush3.msra.mxu1 %v1272_v16 }
 0x5b3   :  { %1866 = vmatprep.subr.mxu1 %v1964_v0 }
 0x647   :  { %v958_v63 = vpop.f32.mrf.mxu1 }
 0x648   :  { %v959_v1 = vadd.f32 %v1503_v61, %v958_v63 }
 0x649   :  { %v1799_v3 = vpop.f32.mrf.mxu1 }
 0x64a   :  { %1450 = vrot.lane.b32.xlu0 %v959_v1, %s1967_s1  ;;  %1833 = vmatmul.mubr.msk.f32.vlgmr.msra.gmra.mxu0 %vm1118_vm10, %v959_v1 }
 0x64b   :  { %1836 = vmatpush3.msk.msra.mxu0 %vm296_vm4, %v1195_v2  ;;  %1841 = vmatprep.mubr.msk.f32.mxu0 %vm1965_vm0, %v1964_v0 }
 0x64c   :  { %1837 = vmatprep.subr.mxu0 %v1964_v0 }
 0x64d   :  { %1838 = vmatpush3.msra.mxu0 %v1194_v5 }
 0x64e   :  { %1839 = vmatprep.subr.mxu0 %v1964_v0 }
 0x64f   :  { %1840 = vmatpush3.msra.mxu0 %v1193_v8 }
 0x650   :  { %1842 = vmatmul.mubr.msk.f32.vlgmr.msra.gmra.mxu0 %vm292_vm5, %v2031_v26  ;;  %1873 = vmatprep.subr.mxu0 %v1964_v0  ;;  %v1271_v26 = vld [vmem:[#allocation5 + $0x2d0] sm:$0xff] }
 0x651   :  { %1881 = vmatprep.mubr.msk.f32.mxu0 %vm1965_vm0, %v1964_v0  ;;  %1867 = vmatpush3.msra.mxu1 %v1271_v26 }
 0x652   :  { %1868 = vmatprep.subr.mxu1 %v1964_v0  ;;  %1874 = vmatpush3.msra.mxu0 %v1369_v18 }
 0x653   :  { %v1039_v10 = vpop.f32.mrf.mxu1  ;;  %1869 = vmatpush3.msra.mxu1 %v1270_v17  ;;  %1875 = vmatprep.subr.mxu0 %v1964_v0 }
 0x654   :  { %1876 = vmatpush3.msra.mxu0 %v1368_v27 }
 0x655   :  { %v1814_v11 = vpop.f32.mrf.mxu1  ;;  %1877 = vmatprep.subr.mxu0 %v1964_v0 }
 0x656   :  { %1878 = vmatpush3.msra.mxu0 %v1367_v28 }
 0x657   :  { %1879 = vmatprep.subr.mxu0 %v1964_v0 }
 0x658   :  { %1880 = vmatpush3.msra.mxu0 %v1366_v29 }
 0x65d   :  { %v1112_v12 = vpop.f32.mrf.mxu1 }
 0x65e   :  { %v1113_v13 = vadd.f32 %v1112_v12, %v1039_v10 }
 0x65f   :  { %v1827_v14 = vpop.f32.mrf.mxu1 }
 0x6bc   :  { %v1451_v19 = vpop.permute.xlu0 %1450 }
 0x6bd   :  { %1454 = vst.msk [vmem:[#allocation7] sm:$0xff] %vm1453_vm11, %v1451_v19 }
 0x70a   :  { %v1188_v20 = vpop.f32.mrf.mxu0 }
 0x70b   :  { %v1192_v22 = vadd.f32 %v1188_v20, %v1113_v13 }
 0x70c   :  { %v1834_v21 = vpop.f32.mrf.mxu0 }
 0x710   :  { %v1265_v23 = vpop.f32.mrf.mxu0 }
 0x711   :  { %v1269_v24 = vmul.f32 %v1265_v23, %v1192_v22 }
 0x712   :  { %v1843_v25 = vpop.f32.mrf.mxu0 }
 0x713   :  { %1871 = vmatmul.mubr.msk.f32.vlgmr.msra.gmra.mxu1 %vm1288_vm12, %v1269_v24 }
 0x7d3   :  { %v1361_v31 = vpop.f32.mrf.mxu1 }
 0x7d4   :  { %v1362_v32 = vadd.f32 %v1511_v30, %v1361_v31 }
 0x7d5   :  { %v1872_v33 = vpop.f32.mrf.mxu1 }
 0x7d6   :  { %v1365_v34 = vmax.f32 %v1362_v32, 0.0 }
 0x7d8   :  { %1882 = vmatmul.mubr.msk.f32.vlgmr.msra.gmra.mxu0 %vm137_vm3, %v1365_v34 }
 0x898   :  { %v1444_v36 = vpop.f32.mrf.mxu0 }
 0x899   :  { %v1445_v37 = vadd.f32 %v1514_v35, %v1444_v36 }
 0x89a   :  { %v1883_v38 = vpop.f32.mrf.mxu0 }
 0x89b   :  { %1456 = vrot.lane.b32.xlu0 %v1445_v37, %s1968_s21 }
 0x90d   :  { %v1457_v0 = vpop.permute.xlu0 %1456 }
 0x90e   :  { %1460 = vst.msk [vmem:[#allocation7] sm:$0xff] %vm1459_vm13, %v1457_v0 }
 0x90f   :  { %1465 = vst.msk [vmem:[#allocation7] sm:$0xff] %vm1464_vm14, %v1462_v39 }
 0x910   :  { %1945 = shalt.err (!%p1942_p0)
}
 0x911   :  { %1475 = dma.vmem_to_hbm [thread:$0]  %s1473_s23, 128, %s2170_s2, [#allocation4]  }
 0x912   :  { %1958 = dma.done.wait [#allocation4], 128  }
 0x913   :  { %1959 = vsyncadd [#allocation4], 4294967168 }
 0x914   :  { %1479 = vsyncpa [#allocation3], 1 }
 0x915   :  { %1480 = vsyncpa [#allocation6], 1 }
 0x916   :  { %1481 = vsyncpa [#allocation4], 1 }

</bundles_post_ra>
